<compile_context>
chip_gen: v5e
topology: v5e:2x2
jax: 0.10.0
libtpu: 0.0.40
codegen_flags: <defaults>
</compile_context>

<pallas_src>
import jax
import jax.numpy as jnp
from jax.experimental import pallas as pl
from jax.experimental.pallas import tpu as pltpu


def _round_up(x, m):
    return ((x + m - 1) // m) * m


def node_apply_kernel(x_ref, w_ref, b_ref, o_ref):
    # MXU matmul (bf16 inputs, f32 accumulate), f32 bias + ReLU epilogue (VPU),
    # cast at the store.
    h = jnp.dot(x_ref[...], w_ref[...], preferred_element_type=jnp.float32)
    h = h + b_ref[...]                 # (TM, out_pad) + (1, out_pad) sublane broadcast
    h = jnp.maximum(h, 0.0)            # activation = ReLU
    o_ref[...] = h.astype(o_ref.dtype)


def node_apply(x, w, b, *, tm=1024):
    """ReLU(x @ w.T + b).

    x: (N, in_feats) node features
    w: (out_feats, in_feats) nn.Linear weight
    b: (out_feats,) nn.Linear bias
    """
    N, in_feats = x.shape
    out_feats = w.shape[0]
    out_dtype = x.dtype

    LANE = 128
    in_pad = _round_up(in_feats, LANE)
    out_pad = _round_up(out_feats, LANE)

    # Row tile: big enough to amortize the ~0.35 us per-grid-step overhead,
    # multiple of 8 sublanes, clamped to the (padded) node count.
    tm = min(tm, _round_up(N, 8))
    tm = _round_up(tm, 8)
    n_pad = _round_up(N, tm)

    # bf16 matmul inputs, zero-padded to lane-dense shapes. Zero padding is
    # exact: padded K columns contribute 0 to the dot, padded output columns
    # get bias 0 -> ReLU(0) = 0 and are sliced away below.
    x_p = jnp.zeros((n_pad, in_pad), jnp.bfloat16)
    x_p = x_p.at[:N, :in_feats].set(x.astype(jnp.bfloat16))
    w_tp = jnp.zeros((in_pad, out_pad), jnp.bfloat16)
    w_tp = w_tp.at[:in_feats, :out_feats].set(w.T.astype(jnp.bfloat16))
    b_p = jnp.zeros((1, out_pad), jnp.float32)
    b_p = b_p.at[0, :out_feats].set(b.astype(jnp.float32))

    grid = (n_pad // tm,)
    out_full = pl.pallas_call(
        node_apply_kernel,
        out_shape=jax.ShapeDtypeStruct((n_pad, out_pad), out_dtype),
        grid=grid,
        in_specs=[
            pl.BlockSpec((tm, in_pad), lambda i: (i, 0)),      # streamed row tiles
            pl.BlockSpec((in_pad, out_pad), lambda i: (0, 0)),  # weight: VMEM-resident
            pl.BlockSpec((1, out_pad), lambda i: (0, 0)),       # bias: VMEM-resident
        ],
        out_specs=pl.BlockSpec((tm, out_pad), lambda i: (i, 0)),
        compiler_params=pltpu.CompilerParams(
            dimension_semantics=("parallel",),
        ),
    )(x_p, w_tp, b_p)

    return out_full[:N, :out_feats]


def init_linear_params(key, in_feats, out_feats, dtype=jnp.float32):
    # Deterministic init mirroring nn.Linear: U(-1/sqrt(in), 1/sqrt(in)).
    kw, kb = jax.random.split(key)
    bound = 1.0 / jnp.sqrt(jnp.asarray(in_feats, dtype))
    w = jax.random.uniform(kw, (out_feats, in_feats), dtype, -bound, bound)
    b = jax.random.uniform(kb, (out_feats,), dtype, -bound, bound)
    return w, b


if __name__ == "__main__":
    key = jax.random.PRNGKey(0)
    k_x, k_p = jax.random.split(key)

    # Small GCN-policy shapes consistent with the module.
    # TODO(synk): at these toy sizes this op should be fused into the graph
    # aggregation / batched over many graphs; standalone it is launch-bound.
    N = 8            # number of graph nodes
    in_feats = 16
    out_feats = 32

    x = jax.random.normal(k_x, (N, in_feats), jnp.float32)
    w, b = init_linear_params(k_p, in_feats, out_feats)

    h = node_apply(x, w, b)
    jax.block_until_ready(h)

    # Pure-JAX reference check of the forward semantics (bf16 matmul tolerance).
    h_ref = jnp.maximum(x @ w.T + b, 0.0)
    assert h.shape == (N, out_feats)
    assert jnp.allclose(h, h_ref, atol=2e-2, rtol=2e-2), (
        float(jnp.max(jnp.abs(h - h_ref))))

    print("KERNEL_OK")
</pallas_src>

<mosaic_0001>
module attributes {stable_mosaic.version = 11 : i64} {
  func.func @node_apply_kernel(%arg0: i32, %arg1: memref<8x128xbf16, #tpu.memory_space<vmem>>, %arg2: memref<128x128xbf16, #tpu.memory_space<vmem>>, %arg3: memref<1x128xf32, #tpu.memory_space<vmem>>, %arg4: memref<8x128xf32, #tpu.memory_space<vmem>>) attributes {dimension_semantics = [#tpu.dimension_semantics<parallel>], iteration_bounds = array<i64: 1>, scalar_prefetch = 0 : i64, scratch_operands = 0 : i64, tpu.core_type = #tpu.core_type<tc>, window_params = [{transform_indices = @transform_0, window_bounds = array<i64: 8, 128>}, {pipeline_mode = #tpu.pipeline_mode<synchronous>, transform_indices = @transform_1, window_bounds = array<i64: 128, 128>}, {pipeline_mode = #tpu.pipeline_mode<synchronous>, transform_indices = @transform_2, window_bounds = array<i64: 1, 128>}, {transform_indices = @transform_3, window_bounds = array<i64: 8, 128>}]} {
    %c0 = arith.constant 0 : index
    %c0_0 = arith.constant 0 : index
    %0 = vector.load %arg1[%c0, %c0_0] : memref<8x128xbf16, #tpu.memory_space<vmem>>, vector<8x128xbf16>
    %c0_1 = arith.constant 0 : index
    %c0_2 = arith.constant 0 : index
    %1 = vector.load %arg2[%c0_1, %c0_2] : memref<128x128xbf16, #tpu.memory_space<vmem>>, vector<128x128xbf16>
    %cst = arith.constant dense<0.000000e+00> : vector<8x128xf32>
    %2 = tpu.matmul %0, %1, %cst {dimension_numbers = #tpu.dot_dimension_numbers<[1], [0], [0], [1], [0, 0, 1, 1], [], []>} : vector<8x128xbf16>, vector<128x128xbf16>, vector<8x128xf32> -> vector<8x128xf32>
    %c0_3 = arith.constant 0 : index
    %c0_4 = arith.constant 0 : index
    %3 = vector.load %arg3[%c0_3, %c0_4] : memref<1x128xf32, #tpu.memory_space<vmem>>, vector<1x128xf32>
    %4 = vector.broadcast %3 : vector<1x128xf32> to vector<8x128xf32>
    %5 = arith.addf %2, %4 : vector<8x128xf32>
    %cst_5 = arith.constant 0.000000e+00 : f32
    %6 = vector.broadcast %cst_5 : f32 to vector<8x128xf32>
    %7 = arith.maximumf %5, %6 : vector<8x128xf32>
    %c0_6 = arith.constant 0 : index
    %c0_7 = arith.constant 0 : index
    %8 = vector.load %arg4[%c0_6, %c0_7] : memref<8x128xf32, #tpu.memory_space<vmem>>, vector<8x128xf32>
    tpu.vector_store %arg4[%c0_6, %c0_7], %7 {strides = array<i32>} : memref<8x128xf32, #tpu.memory_space<vmem>>, vector<8x128xf32>,
    return
  }
  func.func @transform_0(%arg0: i32) -> (i32, i32) {
    %c0_i32 = arith.constant 0 : i32
    %c0_i32_0 = arith.constant 0 : i32
    return %arg0, %c0_i32 : i32, i32
  }
  func.func @transform_1(%arg0: i32) -> (i32, i32) {
    %c0_i32 = arith.constant 0 : i32
    %c0_i32_0 = arith.constant 0 : i32
    %c0_i32_1 = arith.constant 0 : i32
    return %c0_i32, %c0_i32_0 : i32, i32
  }
  func.func @transform_2(%arg0: i32) -> (i32, i32) {
    %c0_i32 = arith.constant 0 : i32
    %c0_i32_0 = arith.constant 0 : i32
    %c0_i32_1 = arith.constant 0 : i32
    return %c0_i32, %c0_i32_0 : i32, i32
  }
  func.func @transform_3(%arg0: i32) -> (i32, i32) {
    %c0_i32 = arith.constant 0 : i32
    %c0_i32_0 = arith.constant 0 : i32
    return %arg0, %c0_i32 : i32, i32
  }
}

</mosaic_0001>

<bundles_post_ra>
// kernel: tpu_custom_call.1
= control target key start
LH: loop header
LB: loop body
LE: loop exit
PB: predicated region body
PF: predicated region fallthrough
CT: control target
= control target key end

     0   :  { %8 = vsyncpa [#allocation3], 0  ;;  %s308_s0 = inlined_call_operand.hbm [shape: bf16[8,128], index: 0, kind: input, shape index: {}]   ;;  %s309_s1 = inlined_call_operand.hbm [shape: bf16[128,128], index: 1, kind: input, shape index: {}]   ;;  %s310_s2 = inlined_call_operand.vmem [shape: f32[1,128], index: 2, kind: input, shape index: {}]   ;;  %s311_s3 = inlined_call_operand.hbm [shape: f32[8,128], index: 3, kind: output, shape index: {}]  }
   0x1   :  { %9 = vsyncpa [#allocation6], 0 }
   0x2   :  { %10 = vsyncpa [#allocation4], 0  ;;  %s16_s14 = sshll.u32 %s308_s0, 4  ;;  %s271_s15 = smov [#allocation2]   ;;  %s17_s14 = int_to_ptr.hbm [resolvable:$true] %s16_s14 }
   0x3   :  { %s18_s16 = sshll.u32 %s271_s15, 4  ;;  %s26_s19 = sshll.u32 %s309_s1, 4  ;;  %s19_s16 = int_to_ptr.vmem [resolvable:$true] %s18_s16  ;;  %s27_s19 = int_to_ptr.hbm [resolvable:$true] %s26_s19 }
   0x4   :  { %21 = dma.hbm_to_vmem [thread:$0]  %s17_s14, 64, %s19_s16, [#allocation3]  }
   0x5   :  { %s272_s20 = smov [#allocation5]   ;;  %s273_s22 = smov 64  }
   0x6   :  { %s28_s21 = sshll.u32 %s272_s20, 4  ;;  %s274_s23 = smov 4   ;;  %s29_s21 = int_to_ptr.vmem [resolvable:$true] %s28_s21 }
   0x7   :  { %34 = dma.hbm_to_vmem [thread:$0]  %s27_s19, 1024, %s29_s21, [#allocation6], %s273_s22, %s273_s22, %s274_s23  }
   0x8   :  { %265 = dma.done.wait [#allocation3], 64  }
   0x9   :  { %266 = vsyncadd [#allocation3], 4294967232 }
   0xa   :  { %267 = dma.done.wait [#allocation6], 1024  }
   0xb   :  { %268 = vsyncadd [#allocation6], 4294966272  ;;  %v186_v0 = vld [vmem:[#allocation5 + $0x38] sm:$0xff]  ;;  %v185_v1 = vld [vmem:[#allocation5 + $0x30] sm:$0xff]  ;;  %s275_s24 = smov [#allocation7]   ;;  %s136_s28 = sshll.u32 %s311_s3, 4  ;;  %s137_s28 = int_to_ptr.hbm [resolvable:$true] %s136_s28 }
   0xc   :  { %114 = vmatpush.bf16.msra.mxu0 %v186_v0  ;;  %v184_v2 = vld [vmem:[#allocation5 + $0x28] sm:$0xff]  ;;  %v183_v3 = vld [vmem:[#allocation5 + $0x20] sm:$0xff]  ;;  %v182_v4 = vld [vmem:[#allocation5 + $0x18] sm:$0xff]  ;;  %s134_s25 = sshll.u32 %s275_s24, 4  ;;  %s135_s25 = int_to_ptr.vmem [resolvable:$true] %s134_s25 }
   0xd   :  { %v181_v5 = vld [vmem:[#allocation5 + $0x10] sm:$0xff]  ;;  %v180_v6 = vld [vmem:[#allocation5 + $0x8] sm:$0xff]  ;;  %v179_v7 = vld [vmem:[#allocation5] sm:$0xff] }
   0xe   :  { %v45_v8 = vld [vmem:[#allocation2] sm:$0xf] }
   0xf   :  { %v192_v9 = vld [vmem:[%s310_s2] ss:$0 sm:$0xff] }
  0x10   :  { %115 = vmatpush.bf16.msra.mxu0 %v185_v1 }
  0x14   :  { %116 = vmatpush.bf16.msra.mxu0 %v184_v2 }
  0x18   :  { %117 = vmatpush.bf16.msra.mxu0 %v183_v3 }
  0x1c   :  { %118 = vmatpush.bf16.msra.mxu0 %v182_v4 }
  0x20   :  { %119 = vmatpush.bf16.msra.mxu0 %v181_v5 }
  0x24   :  { %120 = vmatpush.bf16.msra.mxu0 %v180_v6 }
  0x28   :  { %121 = vmatpush.bf16.msra.mxu0 %v179_v7 }
  0x2b   :  { %122 = vmatmul.bf16.vlgmr.msra.gmra.mxu0 %v45_v8 }
  0xa8   :  { %v123_v10 = vpop.f32.mrf.mxu0 }
  0xa9   :  { %v124_v11 = vadd.f32 %v192_v9, %v123_v10 }
  0xab   :  { %v127_v12 = vmax.f32 %v124_v11, 0.0 }
  0xad   :  { %128 = vst [vmem:[#allocation7] sm:$0xff] %v127_v12 }
  0xae   :  { %139 = dma.vmem_to_hbm [thread:$0]  %s135_s25, 128, %s137_s28, [#allocation4]  }
  0xb0   :  { %v125_v13 = vpop.f32.mrf.mxu0 }
  0xb1   :  { %269 = dma.done.wait [#allocation4], 128  }
  0xb2   :  { %270 = vsyncadd [#allocation4], 4294967168 }
  0xb3   :  { %144 = vsyncpa [#allocation3], 1 }
  0xb4   :  { %145 = vsyncpa [#allocation6], 1 }
  0xb5   :  { %146 = vsyncpa [#allocation4], 1 }

</bundles_post_ra>
